<compile_context>
chip_gen: v7x
topology: tpu7x:2x2x1
jax: 0.10.0
libtpu: 0.0.40
codegen_flags: <defaults>
</compile_context>

<pallas_src>
import jax
import jax.numpy as jnp
from jax.experimental import pallas as pl
from jax.experimental.pallas import tpu as pltpu

_LANES = 128
_C0 = 0.7979946   # constant used by the reference module (not exact sqrt(2/pi))
_C1 = 0.044715


def _compute_dtype(dtype):
    # bf16 computes natively (bf16 VPU/EUP on v6e/v7x, auto-promoted on v5e);
    # everything else uses f32 internally.
    return dtype if dtype == jnp.bfloat16 else jnp.float32


def _gelu_math(xf):
    # Horner-folded tanh-approx GELU:
    #   C0*(x + C1*x^3) == x*(C0 + (C0*C1)*x^2)   (saves two VPU muls/elt)
    inner = xf * (_C0 + (_C0 * _C1) * (xf * xf))
    return 0.5 * xf * (1.0 + jnp.tanh(inner))


def _gelu_kernel(x_ref, o_ref):
    x = x_ref[...]
    xf = x.astype(_compute_dtype(x.dtype))
    o_ref[...] = _gelu_math(xf).astype(o_ref.dtype)


def _gelu_jnp(x):
    # Plain-jnp path for tiny tensors and the <128-element tail.
    xf = x.astype(_compute_dtype(x.dtype))
    return _gelu_math(xf).astype(x.dtype)


def _round_up(v, m):
    return ((v + m - 1) // m) * m


def gelu_pallas(x: jax.Array, *, min_kernel_elems: int = 1024) -> jax.Array:
    """Applies tanh-approx GELU elementwise. Works for any shape/float dtype."""
    orig_shape = x.shape
    dtype = x.dtype
    n = x.size
    if n == 0:
        return x

    # Small-tensor fast path: kernel launch + grid setup dominates; XLA's
    # fused elementwise is strictly faster. (Raise the threshold for callers
    # that only ever see large activations.)
    if n < min_kernel_elems:
        return _gelu_jnp(x)

    flat = x.reshape(-1)          # free (metadata-only) for row-major layout
    rows = n // _LANES
    tail = n - rows * _LANES

    if rows == 0:
        return _gelu_jnp(x)

    # Aligned head goes through the kernel; only slice when a tail exists so
    # the common n % 128 == 0 case does zero extra HBM traffic.
    head = flat[: rows * _LANES] if tail else flat
    head2d = head.reshape(rows, _LANES)

    itemsize = dtype.itemsize
    sublane = 8 if itemsize == 4 else (16 if itemsize == 2 else 32)

    # Dtype-aware block size from a ~4 MiB byte budget per buffer: with in+out
    # double-buffered this is ~16 MiB of VMEM (limit raised to 32 MiB below,
    # still comfortably within v7x's 64 MiB physical VMEM).
    target_block_bytes = 4 << 20
    block_rows = max(sublane, target_block_bytes // (_LANES * itemsize))

    rows_rounded = _round_up(rows, sublane)
    br = min(block_rows, rows_rounded)
    # Guarantee >= 2 grid steps when there is enough work so both v7x
    # TensorCores get a share of the parallel axis (no effect on v5e/v6e).
    if rows_rounded > sublane:
        br = min(br, _round_up(pl.cdiv(rows, 2), sublane))
    br = _round_up(br, sublane)

    grid = (pl.cdiv(rows, br),)   # ragged last block handled by Pallas

    head_out = pl.pallas_call(
        _gelu_kernel,
        out_shape=jax.ShapeDtypeStruct((rows, _LANES), dtype),
        grid_spec=pltpu.PrefetchScalarGridSpec(
            num_scalar_prefetch=0,
            grid=grid,
            in_specs=[pl.BlockSpec((br, _LANES), lambda i: (i, 0))],
            out_specs=pl.BlockSpec((br, _LANES), lambda i: (i, 0)),
        ),
        compiler_params=pltpu.CompilerParams(
            dimension_semantics=("parallel",),
            vmem_limit_bytes=32 << 20,   # lifts v5e's 16 MiB default; safe on v6e/v7x
        ),
    )(head2d)

    out_flat = head_out.reshape(-1)
    if tail:
        # <128 leftover elements: plain jnp (no whole-array pad/slice copies).
        tail_out = _gelu_jnp(flat[rows * _LANES:])
        out_flat = jnp.concatenate([out_flat, tail_out])
    return out_flat.reshape(orig_shape)


def gelu_reference(x: jax.Array) -> jax.Array:
    return 0.5 * x * (1.0 + jnp.tanh(_C0 * (x + _C1 * jnp.power(x, 3))))


if __name__ == "__main__":
    key = jax.random.PRNGKey(0)
    k1, k2, k3, k4 = jax.random.split(key, 4)

    # Small NCHW-style activation input (kernel path, n % 128 == 0).
    x = jax.random.normal(k1, (2, 4, 16, 16), dtype=jnp.float32)
    out = jax.block_until_ready(gelu_pallas(x))
    ref = gelu_reference(x)
    assert out.shape == x.shape and out.dtype == x.dtype
    assert jnp.allclose(out, ref, atol=1e-5, rtol=1e-5), "mismatch vs reference"

    # Unaligned path (n % 128 != 0): aligned head via kernel, tail via jnp.
    x_odd = jax.random.normal(k2, (3, 5, 129), dtype=jnp.float32)
    out_odd = jax.block_until_ready(gelu_pallas(x_odd))
    ref_odd = gelu_reference(x_odd)
    assert out_odd.shape == x_odd.shape and out_odd.dtype == x_odd.dtype
    assert jnp.allclose(out_odd, ref_odd, atol=1e-5, rtol=1e-5), "mismatch (tail path)"

    # Tiny tensor: jnp fast path (no kernel launch).
    x_small = jax.random.normal(k3, (3, 5, 7), dtype=jnp.float32)
    out_small = jax.block_until_ready(gelu_pallas(x_small))
    assert jnp.allclose(out_small, gelu_reference(x_small), atol=1e-5, rtol=1e-5), \
        "mismatch (small fast path)"

    # bf16 input: native-bf16 compute inside the kernel (compare vs f32 ref).
    x_bf16 = jax.random.normal(k4, (2, 8, 128), dtype=jnp.bfloat16)
    out_bf16 = jax.block_until_ready(gelu_pallas(x_bf16))
    ref_bf16 = gelu_reference(x_bf16.astype(jnp.float32)).astype(jnp.bfloat16)
    assert out_bf16.shape == x_bf16.shape and out_bf16.dtype == jnp.bfloat16
    assert jnp.allclose(out_bf16.astype(jnp.float32), ref_bf16.astype(jnp.float32),
                        atol=3e-2, rtol=3e-2), "mismatch (bf16 path)"

    print("KERNEL_OK")
</pallas_src>

<mosaic_0001>
module attributes {stable_mosaic.version = 11 : i64} {
  func.func @_gelu_kernel(%arg0: i32, %arg1: memref<8x128xf32, #tpu.memory_space<vmem>>, %arg2: memref<8x128xf32, #tpu.memory_space<vmem>>) attributes {dimension_semantics = [#tpu.dimension_semantics<parallel>], iteration_bounds = array<i64: 2>, scalar_prefetch = 0 : i64, scratch_operands = 0 : i64, tpu.core_type = #tpu.core_type<tc>, window_params = [{transform_indices = @transform_0, window_bounds = array<i64: 8, 128>}, {transform_indices = @transform_1, window_bounds = array<i64: 8, 128>}]} {
    %c0 = arith.constant 0 : index
    %c0_0 = arith.constant 0 : index
    %0 = vector.load %arg1[%c0, %c0_0] : memref<8x128xf32, #tpu.memory_space<vmem>>, vector<8x128xf32>
    %1 = arith.mulf %0, %0 : vector<8x128xf32>
    %cst = arith.constant 0.035682328 : f32
    %2 = vector.broadcast %cst : f32 to vector<8x128xf32>
    %3 = arith.mulf %2, %1 : vector<8x128xf32>
    %cst_1 = arith.constant 0.797994614 : f32
    %4 = vector.broadcast %cst_1 : f32 to vector<8x128xf32>
    %5 = arith.addf %4, %3 : vector<8x128xf32>
    %6 = arith.mulf %0, %5 : vector<8x128xf32>
    %cst_2 = arith.constant 5.000000e-01 : f32
    %7 = vector.broadcast %cst_2 : f32 to vector<8x128xf32>
    %8 = arith.mulf %7, %0 : vector<8x128xf32>
    %9 = math.tanh %6 : vector<8x128xf32>
    %cst_3 = arith.constant 1.000000e+00 : f32
    %10 = vector.broadcast %cst_3 : f32 to vector<8x128xf32>
    %11 = arith.addf %10, %9 : vector<8x128xf32>
    %12 = arith.mulf %8, %11 : vector<8x128xf32>
    %c0_4 = arith.constant 0 : index
    %c0_5 = arith.constant 0 : index
    %13 = vector.load %arg2[%c0_4, %c0_5] : memref<8x128xf32, #tpu.memory_space<vmem>>, vector<8x128xf32>
    tpu.vector_store %arg2[%c0_4, %c0_5], %12 {strides = array<i32>} : memref<8x128xf32, #tpu.memory_space<vmem>>, vector<8x128xf32>,
    return
  }
  func.func @transform_0(%arg0: i32) -> (i32, i32) {
    %c0_i32 = arith.constant 0 : i32
    %c0_i32_0 = arith.constant 0 : i32
    return %arg0, %c0_i32 : i32, i32
  }
  func.func @transform_1(%arg0: i32) -> (i32, i32) {
    %c0_i32 = arith.constant 0 : i32
    %c0_i32_0 = arith.constant 0 : i32
    return %arg0, %c0_i32 : i32, i32
  }
}

</mosaic_0001>

<bundles_post_ra>
// kernel: tpu_custom_call.1
= control target key start
LH: loop header
LB: loop body
LE: loop exit
PB: predicated region body
PF: predicated region fallthrough
CT: control target
= control target key end

     0   :  { %6 = vsyncpa [#allocation3], 0  ;;  %s557_s0 = inlined_call_operand.hbm [shape: f32[16,128], index: 0, kind: input, shape index: {}]   ;;  %s558_s1 = inlined_call_operand.hbm [shape: f32[16,128], index: 1, kind: output, shape index: {}]  }
   0x1   :  { %8 = vsyncpa [#allocation3 + $0x1], 0 }
   0x2   :  { %9 = vsyncpa [#allocation4], 0 }
   0x3   :  { %11 = vsyncpa [#allocation4 + $0x1], 0  ;;  %s396_s6 = smov 0   ;;  %s398_s7 = smov 0  }
   0x4   :  { %s400_s8 = smov 0   ;;  %s402_s9 = smov 0  }
   0x5 LB: > { %s417_s10 = sadd.s32 4294967295, %s382_s9   ;;  %s226_s11 = sadd.s32 4294967294, %s382_s9   ;;  %s382_s9 = sphi %s402_s9, %s573_s9   ;;  %s378_s8 = sphi %s400_s8, %s572_s8   ;;  %s374_s7 = sphi %s398_s7, %s571_s7   ;;  %s370_s6 = sphi %s396_s6, %s570_s6  }
   0x6   : > { %s421_s12 = sadd.s32 1, %s382_s9   ;;  %s24_s13 = sadd.s32 1, %s378_s8 }
   0x7   : > { %s21_s14 = ssub.s32 %s382_s9, %s421_s12  ;;  %p31_p0 = scmp.ne.s32.totalorder %s378_s8, %s374_s7 }
   0x8   : > { %p22_p1 = scmp.eq.s32.totalorder %s21_s14, 0  ;;  %p32_p2 = scmp.eq.s32.totalorder %s382_s9, 0 }
   0x9   : > { %p37_p3 = scmp.ne.s32.totalorder %s374_s7, %s370_s6  ;;  %p38_p4 = scmp.eq.s32.totalorder %s417_s10, 0 }
   0xa   : > { %s433_s15 = scalar_select %p22_p1, %s378_s8, %s24_s13  }
   0xb   : > { %p435_p5 = por %p32_p2, %p31_p0  ;;  %p439_p6 = por %p38_p4, %p37_p3 }
   0xc   : > { %p61_p7 = scmp.eq.s32.totalorder %s417_s10, 1  ;;  %p67_p8 = scmp.eq.s32.totalorder %s226_s11, 1 }
   0xd   : > { %p250_p10 = scmp.lt.s32.totalorder %s382_s9, 2  ;;  %s87_s20 = sand.u32 1, %s378_s8  }
   0xe   : > { %p446_p11 = por %p61_p7, %p31_p0  ;;  %p450_p12 = por %p67_p8, %p37_p3 }
   0xf   : > { %s230_s21 = sshll.u32 %s382_s9, 7  ;;  %s229_s22 = sshll.u32 %s87_s20, 3 }
  0x10   : > { %s562_s18 = scalar_select %p446_p11, 1, 0 }
  0x11   : > { %s563_s19 = scalar_select %p450_p12, 1, 0 }
  0x12   : > { %s459_s25 = scalar_lea.hbm %s557_s0, %s230_s21  ;;  %s91_s26 = scalar_lea.vmem [#allocation2], %s229_s22 }
  0x13   : > { %s98_s27 = sshll.u32 %s91_s26, 4  ;;  %p463_p13 = pnand %p250_p10, %p435_p5  ;;  %s467_s27 = int_to_ptr.vmem [resolvable:$true] %s98_s27 }
  0x14   : > { %s88_s29 = scalar_lea.sflag [#allocation3], %s87_s20  ;;  %s286_s30 = scalar_lea.hbm %s459_s25, 128 }
  0x15   : > { %p287_p2 = scmp.ne.s32.totalorder %s459_s25, %s286_s30  ;;  %p288_p3 = pneg %p463_p13 }
  0x16   : > { %s291_s4 = scalar_lea.hbm %s557_s0, 256  ;;  %p292_p5 = scmp.lt.u32.totalorder %s459_s25, %s557_s0 }
  0x17   : > { %p289_p4 = pnand %p288_p3, %p287_p2  ;;  %p293_p8 = scmp.lt.u32.totalorder %s291_s4, %s286_s30 }
  0x18   : > { %p295_p9 = scmp.lt.u32.totalorder %s286_s30, %s459_s25 }
  0x19   : > { %p290_p7 = pneg %p289_p4  ;;  %p294_p10 = por %p293_p8, %p292_p5 }
  0x1b   : > { %p296_p0 = por %p295_p9, %p294_p10 }
  0x1d   : > { %p297_p1 = pnand %p296_p0, %p290_p7 }
  0x1f   : > { %300 = shalt.err (!%p297_p1)
}
  0x20   : > { %s301_s13 = scalar_lea.vmem %s467_s27, 128  ;;  %s384_s14 = smov [#allocation2]  }
  0x21   : > { %p302_p2 = scmp.ne.s32.totalorder %s467_s27, %s301_s13  ;;  %s306_s16 = sshll.u32 %s384_s14, 4  ;;  %s307_s16 = int_to_ptr.vmem [resolvable:$false] %s306_s16 }
  0x22   : > { %s308_s20 = scalar_lea.vmem %s307_s16, 256  ;;  %p309_p11 = scmp.lt.s32.totalorder %s467_s27, %s307_s16 }
  0x23   : > { %p304_p4 = pnand %p302_p2, %p288_p3  ;;  %p310_p5 = scmp.lt.s32.totalorder %s308_s20, %s301_s13 }
  0x25   : > { %p305_p12 = pneg %p304_p4  ;;  %p311_p8 = por %p310_p5, %p309_p11 }
  0x27   : > { %p312_p9 = pnand %p311_p8, %p305_p12 }
  0x29   : > { %315 = shalt.err (!%p312_p9)
}
  0x2a   : > { %245 = dma.hbm_to_vmem [thread:$0]  (!%p463_p13), %s459_s25, 128, %s467_s27, %s88_s29  }
  0x2b   : > { %p565_p0 = scmp.lt.s32.totalorder %s382_s9, 3  ;;  %p566_p1 = scmp.ge.s32.totalorder %s382_s9, 1 }
  0x2d   : > { %p104_p3 = pnand %p566_p1, %p565_p0 }
  0x2e   : > { %s501_s21 = sand.u32 (!%p104_p3), 1, %s374_s7  }
  0x2f   : > { %107 = sbr.rel (%p104_p3) target bundleno = 93 (0x5d), region = 24  ;;  %s232_s22 = sshll.u32 (!%p104_p3), %s501_s21, 3 }
  0x30   : > { %s110_s23 = scalar_lea.sflag (!%p104_p3), [#allocation3], %s501_s21  ;;  %s113_s24 = scalar_lea.vmem (!%p104_p3), [#allocation2], %s232_s22 }
  0x36   : > { %361 = dma.done.wait (%p439_p6), %s110_s23, 128  }
  0x37   : > { %363 = vsyncadd (%p439_p6), %s110_s23, 4294967168  ;;  %v132_v0 = vld [vmem:[%s113_s24] sm:$0xff]  ;;  %s131_s25 = scalar_lea.vmem [#allocation5], %s232_s22  ;;  %s235_s27 = sshll.u32 %s417_s10, 7 }
  0x38   : > { %v133_v1 = vmul.f32 %v132_v0, %v132_v0  ;;  %v137_v5 = vmul.f32 0.5, %v132_v0  ;;  %s156_s26 = sshll.u32 %s131_s25, 4  ;;  %s515_s29 = scalar_lea.hbm %s558_s1, %s235_s27  ;;  %s510_s26 = int_to_ptr.vmem [resolvable:$true] %s156_s26 }
  0x39   : > { %s143_s30 = scalar_lea.sflag [#allocation4], %s501_s21  ;;  %s316_s2 = scalar_lea.vmem %s510_s26, 128 }
  0x3a   : > { %v134_v2 = vmul.f32 0.035682328, %v133_v1  ;;  %p317_p6 = scmp.ne.s32.totalorder %s510_s26, %s316_s2  ;;  %p567_p11 = scmp.ne.s32.totalorder %s562_s18, 0 }
  0x3b   : > { %s385_s10 = smov [#allocation5]  }
  0x3c   : > { %v135_v3 = vadd.f32 0.7979946, %v134_v2  ;;  %p318_p12 = pnand %p317_p6, %p567_p11  ;;  %s320_s3 = sshll.u32 %s385_s10, 4  ;;  %s321_s3 = int_to_ptr.vmem [resolvable:$false] %s320_s3 }
  0x3d   : > { %s322_s4 = scalar_lea.vmem %s321_s3, 256  ;;  %p323_p7 = scmp.lt.s32.totalorder %s510_s26, %s321_s3 }
  0x3e   : > { %v136_v4 = vmul.f32 %v135_v3, %v132_v0  ;;  %p319_p13 = pneg %p318_p12  ;;  %p324_p10 = scmp.lt.s32.totalorder %s322_s4, %s316_s2 }
  0x40   : > { %284 = vtanh.f32 %v136_v4  ;;  %p325_p2 = por %p324_p10, %p323_p7 }
  0x42   : > { %p326_p4 = pnand %p325_p2, %p319_p13 }
  0x4a   : > { %v285_v6 = vpop.eup %284 }
  0x4b   : > { %v139_v7 = vadd.f32 1.0, %v285_v6 }
  0x4d   : > { %v140_v8 = vmul.f32 %v139_v7, %v137_v5 }
  0x4f   : > { %141 = vst [vmem:[%s131_s25] sm:$0xff] %v140_v8 }
  0x50   : > { %329 = shalt.err (!%p326_p4)
}
  0x51   : > { %s330_s5 = scalar_lea.hbm %s515_s29, 128  ;;  %s334_s14 = scalar_lea.hbm %s558_s1, 256 }
  0x52   : > { %p331_p5 = scmp.ne.s32.totalorder %s515_s29, %s330_s5  ;;  %p335_p0 = scmp.lt.u32.totalorder %s515_s29, %s558_s1 }
  0x53   : > { %p336_p1 = scmp.lt.u32.totalorder %s334_s14, %s330_s5  ;;  %p338_p6 = scmp.lt.u32.totalorder %s330_s5, %s515_s29 }
  0x54   : > { %p332_p8 = pnand %p331_p5, %p567_p11 }
  0x55   : > { %p337_p3 = por %p336_p1, %p335_p0 }
  0x56   : > { %p333_p9 = pneg %p332_p8 }
  0x57   : > { %p339_p12 = por %p338_p6, %p337_p3 }
  0x59   : > { %p340_p13 = pnand %p339_p12, %p333_p9 }
  0x5b   : > { %343 = shalt.err (!%p340_p13)
}
  0x5c   : > { %240 = dma.vmem_to_hbm [thread:$0]  (%p567_p11), %s510_s26, 128, %s515_s29, %s143_s30  }
  0x5d PF: > { %s168_s21 = sand.u32 1, %s370_s6   ;;  %p568_p7 = scmp.ne.s32.totalorder %s563_s19, 0 }
  0x5e   : > { %p569_p10 = scmp.ge.s32.totalorder %s382_s9, 2  ;;  %s169_s22 = scalar_lea.sflag [#allocation4], %s168_s21 }
  0x60   : > { %p247_p2 = pnand %p569_p10, %p568_p7 }
  0x62   : > { %365 = dma.done.wait (!%p247_p2), %s169_s22, 128  }
  0x63   : > { %367 = vsyncadd (!%p247_p2), %s169_s22, 4294967168  ;;  %p14_p4 = scmp.ge.s32.totalorder %s421_s12, 4   ;;  %s570_s6 = smov %s374_s7 }
  0x64   : > { %s571_s7 = smov %s378_s8  ;;  %s572_s8 = smov %s433_s15 }
  0x65   : > { %s573_s9 = smov %s421_s12  ;;  %16 = sbr.rel (!%p14_p4) target bundleno = 5 (0x5), region = 69 }
  0x6c   :  { %174 = vsyncpa [#allocation3], 1 }
  0x6d   :  { %176 = vsyncpa [#allocation3 + $0x1], 1 }
  0x6e   :  { %177 = vsyncpa [#allocation4], 1 }
  0x6f   :  { %179 = vsyncpa [#allocation4 + $0x1], 1 }

</bundles_post_ra>
